<compile_context>
chip_gen: v5e
topology: v5e:2x2
jax: 0.10.0
libtpu: 0.0.40
codegen_flags: <defaults>
</compile_context>

<pallas_src>
import functools

import jax
import jax.numpy as jnp
from jax.experimental import pallas as pl
from jax.experimental.pallas import tpu as pltpu


def _round_up(x: int, m: int) -> int:
    return ((x + m - 1) // m) * m


def _single_index_kernel(x_ref, w_ref, b_ref, o_ref, acc_ref, *,
                         activation, rb, d_last):
    """One (batch-tile, D-tile) grid step.

    x_ref  : (TB, TD) VMEM  current x tile (edge tiles may be ragged)
    w_ref  : (1, TD)  VMEM  matching weight chunk
    b_ref  : (1,)     SMEM  bias scalar
    o_ref  : (TB, 1)  VMEM  output tile (written once, at the last D step)
    acc_ref: (TB, 1)  f32 VMEM accumulator, resident across the D axis
    d_last : static number of valid lanes in the LAST D tile (== TD if aligned)
    """
    k = pl.program_id(1)
    nk = pl.num_programs(1)
    tb, td = x_ref.shape                      # static block shape

    @pl.when(k == 0)
    def _init():
        acc_ref[...] = jnp.zeros_like(acc_ref)

    def accumulate(d_valid):
        # Fold `d_valid` valid lanes of this tile into acc_ref, `rb` rows at a
        # time so the live register accumulator stays at a handful of vregs.
        n_full = d_valid // 128
        rem = d_valid % 128

        def process(lo_r, nrows):
            rows = pl.ds(lo_r, nrows)
            s = jnp.zeros((nrows, 1), jnp.float32)
            if n_full:
                # Two interleaved f32 accumulators -> half the add-latency chain.
                acc0 = jnp.zeros((nrows, 128), jnp.float32)
                acc1 = jnp.zeros((nrows, 128), jnp.float32)
                for c in range(n_full):        # lane-aligned, VALU-only chunks
                    lo = c * 128
                    prod = (x_ref[rows, lo:lo + 128].astype(jnp.float32)
                            * w_ref[:, lo:lo + 128].astype(jnp.float32))
                    if c % 2 == 0:
                        acc0 = acc0 + prod
                    else:
                        acc1 = acc1 + prod
                s = s + jnp.sum(acc0 + acc1, axis=-1, keepdims=True)
            if rem:                            # static ragged tail (< 128 lanes)
                lo = n_full * 128
                s = s + jnp.sum(x_ref[rows, lo:lo + rem].astype(jnp.float32)
                                * w_ref[:, lo:lo + rem].astype(jnp.float32),
                                axis=-1, keepdims=True)
            acc_ref[rows, :] = acc_ref[rows, :] + s

        n_groups = tb // rb
        row_tail = tb % rb
        if n_groups > 1:
            def body(g, carry):
                process(pl.multiple_of(g * rb, rb), rb)
                return carry
            jax.lax.fori_loop(0, n_groups, body, 0)
        elif n_groups == 1:
            process(0, rb)
        if row_tail:
            process(n_groups * rb, row_tail)

    if d_last == td:
        accumulate(td)                         # D divides evenly: one code path
    else:
        @pl.when(k != nk - 1)
        def _steady():
            accumulate(td)

        @pl.when(k == nk - 1)
        def _ragged():
            accumulate(d_last)                 # last D tile: only d_last lanes valid

    @pl.when(k == nk - 1)
    def _finalize():
        y = acc_ref[...] + b_ref[0]
        o_ref[...] = activation(y).astype(o_ref.dtype)


def single_index_forward(x, weight, bias, *, activation=jax.nn.relu,
                         block_b: int = 256,
                         block_bytes: int = 8 * 1024 * 1024,
                         block_d=None,
                         row_block: int = 32):
    """y = activation(x @ weight.T + bias);  weight: (1, D), bias: (1,)."""
    B, D = x.shape
    assert weight.shape == (1, D)
    assert bias.shape == (1,)
    assert block_b % 8 == 0

    itemsize = jnp.dtype(x.dtype).itemsize

    # ---- batch tiling: multiple of 8, or the full (possibly ragged) batch ----
    if B > block_b:
        TB = block_b
    elif B >= 16:
        # >= 2 batch tiles so both v7x TensorCores get work (harmless elsewhere)
        TB = _round_up(-(-B // 2), 8)
    else:
        TB = B                                  # single full-dim tile
    bt = -(-B // TB)

    # ---- D tiling: sized in bytes so bf16/int8 still stream ~block_bytes/step ----
    if block_d is None:
        td_target = max(128, (block_bytes // max(TB, 1) // itemsize) // 128 * 128)
    else:
        assert block_d % 128 == 0
        td_target = block_d
    Dp128 = _round_up(D, 128)
    if Dp128 <= td_target:
        TD, kd = D, 1                           # whole D resident; weight fetched once
    else:
        TD = td_target
        kd = -(-D // TD)
    d_last = D - (kd - 1) * TD                  # valid lanes in the last D tile

    rb = min(row_block, TB)

    bias_smem = bias.reshape(1).astype(jnp.float32)

    kernel = functools.partial(_single_index_kernel, activation=activation,
                               rb=rb, d_last=d_last)

    # Explicit VMEM budget: double-buffered x + weight + headroom.  Covers the
    # v5e 16 MiB scoped default; stays under v7x's 64 MiB physical VMEM.
    x_tile_bytes = _round_up(TB, 8) * _round_up(TD, 128) * itemsize
    w_tile_bytes = 8 * _round_up(TD, 128) * jnp.dtype(weight.dtype).itemsize
    vmem_limit = int(max(2 * x_tile_bytes + 2 * w_tile_bytes + (8 << 20), 32 << 20))

    out = pl.pallas_call(
        kernel,
        out_shape=jax.ShapeDtypeStruct((B, 1), x.dtype),
        grid_spec=pltpu.PrefetchScalarGridSpec(
            num_scalar_prefetch=0,
            grid=(bt, kd),
            in_specs=[
                pl.BlockSpec((TB, TD), lambda i, k: (i, k)),          # x tile
                pl.BlockSpec((1, TD), lambda i, k: (0, k)),           # weight chunk
                pl.BlockSpec(memory_space=pltpu.MemorySpace.SMEM),    # bias (4 B)
            ],
            out_specs=pl.BlockSpec((TB, 1), lambda i, k: (i, 0)),
            scratch_shapes=[pltpu.VMEM((TB, 1), jnp.float32)],
        ),
        compiler_params=pltpu.CompilerParams(
            dimension_semantics=("parallel", "arbitrary"),
            vmem_limit_bytes=vmem_limit),
        cost_estimate=pl.CostEstimate(
            flops=2 * B * D,
            transcendentals=0,
            bytes_accessed=B * D * itemsize + D * itemsize + B * itemsize),
    )(x, weight, bias_smem)

    return out


def init_single_index_params(key, dimension, u_norm=None, dtype=jnp.float32):
    # Matches PyTorch __init__: u = randn(1, D) / sqrt(D); bias frozen at 0.
    u = jax.random.normal(key, (1, dimension), dtype=jnp.float32) / jnp.sqrt(
        jnp.asarray(dimension, jnp.float32))
    if u_norm is not None:
        u = u * (u_norm / jnp.linalg.norm(u))
    bias = jnp.zeros((1,), dtype=jnp.float32)
    return u.astype(dtype), bias.astype(dtype)


if __name__ == "__main__":
    key = jax.random.PRNGKey(0)
    k_x, k_w, k_x2, k_w2 = jax.random.split(key, 4)

    # Small config consistent with the module: one resident-weight batch tile.
    batch, dimension = 8, 32
    x = jax.random.normal(k_x, (batch, dimension), dtype=jnp.float32)
    weight, bias = init_single_index_params(k_w, dimension)
    out = jax.block_until_ready(single_index_forward(x, weight, bias))
    ref = jax.nn.relu(x @ weight.T + bias)
    assert out.shape == (batch, 1)
    assert jnp.allclose(out, ref, atol=1e-5, rtol=1e-5)

    # Ragged multi-tile config: 2 batch tiles (one partial), 3 D tiles with a
    # 44-lane ragged tail, f32 accumulator resident across the D axis.
    batch2, dim2 = 24, 300
    x2 = jax.random.normal(k_x2, (batch2, dim2), dtype=jnp.float32)
    w2, b2 = init_single_index_params(k_w2, dim2, u_norm=1.0)
    out2 = jax.block_until_ready(
        single_index_forward(x2, w2, b2, block_b=16, block_d=128))
    ref2 = jax.nn.relu(jnp.sum(x2 * w2[0], axis=-1, keepdims=True) + b2)
    assert out2.shape == (batch2, 1)
    assert jnp.allclose(out2, ref2, atol=1e-5, rtol=1e-5)

    print("KERNEL_OK")
</pallas_src>

<mosaic_0001>
module attributes {stable_mosaic.version = 11 : i64} {
  func.func @_single_index_kernel(%arg0: i32, %arg1: i32, %arg2: memref<8x32xf32, #tpu.memory_space<vmem>>, %arg3: memref<1x32xf32, #tpu.memory_space<vmem>>, %arg4: memref<1xf32, #tpu.memory_space<smem>>, %arg5: memref<8x1xf32, #tpu.memory_space<vmem>>, %arg6: memref<8x1xf32, #tpu.memory_space<vmem>>) attributes {dimension_semantics = [#tpu.dimension_semantics<parallel>, #tpu.dimension_semantics<arbitrary>], iteration_bounds = array<i64: 1, 1>, scalar_prefetch = 0 : i64, scratch_operands = 1 : i64, tpu.core_type = #tpu.core_type<tc>, window_params = [{transform_indices = @transform_0, window_bounds = array<i64: 8, 32>}, {transform_indices = @transform_1, window_bounds = array<i64: 1, 32>}, {transform_indices = @transform_2, window_bounds = array<i64: 1>}, {transform_indices = @transform_3, window_bounds = array<i64: 8, 1>}]} {
    %c0_i32 = arith.constant 0 : i32
    %0 = arith.cmpi eq, %arg1, %c0_i32 : i32
    %1 = arith.extui %0 : i1 to i32
    %c0_i32_0 = arith.constant 0 : i32
    %2 = arith.cmpi ne, %1, %c0_i32_0 : i32
    scf.if %2 {
      %cst_11 = arith.constant 0.000000e+00 : f32
      %17 = vector.broadcast %cst_11 : f32 to vector<8x1xf32>
      %c0_12 = arith.constant 0 : index
      %c0_13 = arith.constant 0 : index
      %18 = vector.load %arg6[%c0_12, %c0_13] : memref<8x1xf32, #tpu.memory_space<vmem>>, vector<8x1xf32>
      tpu.vector_store %arg6[%c0_12, %c0_13], %17 {strides = array<i32>} : memref<8x1xf32, #tpu.memory_space<vmem>>, vector<8x1xf32>,
    } else {
    }
    %cst = arith.constant 0.000000e+00 : f32
    %3 = vector.broadcast %cst : f32 to vector<8x1xf32>
    %c0 = arith.constant 0 : index
    %c0_1 = arith.constant 0 : index
    %4 = vector.load %arg2[%c0, %c0_1] : memref<8x32xf32, #tpu.memory_space<vmem>>, vector<8x32xf32>
    %c0_2 = arith.constant 0 : index
    %c0_3 = arith.constant 0 : index
    %5 = vector.load %arg3[%c0_2, %c0_3] : memref<1x32xf32, #tpu.memory_space<vmem>>, vector<1x32xf32>
    %6 = vector.broadcast %5 : vector<1x32xf32> to vector<8x32xf32>
    %7 = arith.mulf %4, %6 : vector<8x32xf32>
    %cst_4 = arith.constant dense<0.000000e+00> : vector<8xf32>
    %8 = vector.multi_reduction <add>, %7, %cst_4 [1] : vector<8x32xf32> to vector<8xf32>
    %9 = vector.shape_cast %8 : vector<8xf32> to vector<8x1xf32>
    %10 = arith.addf %3, %9 : vector<8x1xf32>
    %c0_5 = arith.constant 0 : index
    %c0_6 = arith.constant 0 : index
    %11 = vector.load %arg6[%c0_5, %c0_6] : memref<8x1xf32, #tpu.memory_space<vmem>>, vector<8x1xf32>
    %12 = arith.addf %11, %10 : vector<8x1xf32>
    %c0_7 = arith.constant 0 : index
    %c0_8 = arith.constant 0 : index
    %13 = vector.load %arg6[%c0_7, %c0_8] : memref<8x1xf32, #tpu.memory_space<vmem>>, vector<8x1xf32>
    tpu.vector_store %arg6[%c0_7, %c0_8], %12 {strides = array<i32>} : memref<8x1xf32, #tpu.memory_space<vmem>>, vector<8x1xf32>,
    %c0_i32_9 = arith.constant 0 : i32
    %14 = arith.cmpi eq, %arg1, %c0_i32_9 : i32
    %15 = arith.extui %14 : i1 to i32
    %c0_i32_10 = arith.constant 0 : i32
    %16 = arith.cmpi ne, %15, %c0_i32_10 : i32
    scf.if %16 {
      %c0_11 = arith.constant 0 : index
      %c0_12 = arith.constant 0 : index
      %17 = vector.load %arg6[%c0_11, %c0_12] : memref<8x1xf32, #tpu.memory_space<vmem>>, vector<8x1xf32>
      %c0_13 = arith.constant 0 : index
      %18 = memref.load %arg4[%c0_13] : memref<1xf32, #tpu.memory_space<smem>>
      %19 = vector.broadcast %18 : f32 to vector<8x1xf32>
      %20 = arith.addf %17, %19 : vector<8x1xf32>
      %cst_14 = arith.constant 0.000000e+00 : f32
      %21 = vector.broadcast %cst_14 : f32 to vector<8x1xf32>
      %22 = arith.maximumf %20, %21 : vector<8x1xf32>
      %c0_15 = arith.constant 0 : index
      %c0_16 = arith.constant 0 : index
      %23 = vector.load %arg5[%c0_15, %c0_16] : memref<8x1xf32, #tpu.memory_space<vmem>>, vector<8x1xf32>
      tpu.vector_store %arg5[%c0_15, %c0_16], %22 {strides = array<i32>} : memref<8x1xf32, #tpu.memory_space<vmem>>, vector<8x1xf32>,
    } else {
    }
    return
  }
  func.func @transform_0(%arg0: i32, %arg1: i32) -> (i32, i32) {
    %c0_i32 = arith.constant 0 : i32
    return %arg0, %arg1 : i32, i32
  }
  func.func @transform_1(%arg0: i32, %arg1: i32) -> (i32, i32) {
    %c0_i32 = arith.constant 0 : i32
    %c0_i32_0 = arith.constant 0 : i32
    return %c0_i32, %arg1 : i32, i32
  }
  func.func @transform_2(%arg0: i32, %arg1: i32) -> i32 {
    %c0_i32 = arith.constant 0 : i32
    %c0_i32_0 = arith.constant 0 : i32
    return %c0_i32 : i32
  }
  func.func @transform_3(%arg0: i32, %arg1: i32) -> (i32, i32) {
    %c0_i32 = arith.constant 0 : i32
    %c0_i32_0 = arith.constant 0 : i32
    return %arg0, %c0_i32 : i32, i32
  }
}

</mosaic_0001>

<bundles_post_ra>
// kernel: tpu_custom_call.1
= control target key start
LH: loop header
LB: loop body
LE: loop exit
PB: predicated region body
PF: predicated region fallthrough
CT: control target
= control target key end

     0   :  { %9 = vsyncpa [#allocation5], 0  ;;  %s93_s15 = smov [#allocation4]   ;;  %s130_s0 = inlined_call_operand.hbm [shape: f32[8,32], index: 0, kind: input, shape index: {}]   ;;  %s131_s1 = inlined_call_operand.vmem [shape: f32[1,32], index: 1, kind: input, shape index: {}]   ;;  %s132_s2 = inlined_call_operand.<no memory space> [shape: f32[1], index: 2, kind: input, shape index: {}]   ;;  %s133_s3 = inlined_call_operand.vmem [shape: f32[8,1], index: 3, kind: output, shape index: {}]  }
   0x1   :  { %s15_s14 = sshll.u32 %s130_s0, 4  ;;  %s17_s16 = sshll.u32 %s93_s15, 4  ;;  %s16_s14 = int_to_ptr.hbm [resolvable:$true] %s15_s14  ;;  %s18_s16 = int_to_ptr.vmem [resolvable:$true] %s17_s16 }
   0x2   :  { %20 = dma.hbm_to_vmem [thread:$0]  %s16_s14, 128, %s18_s16, [#allocation5]  }
   0x3   :  { %91 = dma.done.wait [#allocation5], 128  }
   0x4   :  { %92 = vsyncadd [#allocation5], 4294967168  ;;  %vm33_vm0 = vcmask 7168   ;;  %v94_v0 = vmov 0.0   ;;  %v35_v1 = vld [vmem:[#allocation4] sm:$0xff]  ;;  %vm41_vm1 = vcmask 261120   ;;  %v55_v8 = vstv %s132_s2 }
   0x5   :  { %34 = vst.msk [vmem:[#allocation2] sm:$0xff] %vm33_vm0, %v94_v0  ;;  %v66_v2 = vld [vmem:[%s131_s1] ss:$0 sm:$0xff] }
   0x6   :  { %v40_v3 = vmul.f32 %v66_v2, %v35_v1 }
   0x8   :  { %v42_v4 = vsel %vm41_vm1, %v40_v3, 0.0 }
   0x9   :  { %43 = vadd.xlane.f32.xlu0 %v42_v4 }
   0xc   :  { %v46_v5 = vld [vmem:[#allocation2] sm:$0xff] }
  0x7c   :  { %v44_v6 = vpop.xlane.xlu0 %43 }
  0x7d   :  { %v47_v7 = vadd.f32 %v46_v5, %v44_v6 }
  0x7f   :  { %49 = vst.msk [vmem:[#allocation2] sm:$0xff] %vm33_vm0, %v47_v7 }
  0x86   :  { %v53_v9 = vld [vmem:[#allocation2] sm:$0xff] }
  0x87   :  { %v56_v10 = vadd.f32 %v55_v8, %v53_v9 }
  0x89   :  { %v57_v11 = vmax.f32 %v56_v10, 0.0 }
  0x8b   :  { %58 = vst.msk [vmem:[%s133_s3] sm:$0xff] %vm33_vm0, %v57_v11 }
  0x8c   :  { %63 = vsyncpa [#allocation5], 1 }

</bundles_post_ra>
